<compile_context>
chip_gen: v7x
topology: tpu7x:2x2x1
jax: 0.10.0
libtpu: 0.0.40
codegen_flags: <defaults>
</compile_context>

<pallas_src>
import functools

import jax
import jax.numpy as jnp
import numpy as np
from jax.experimental import pallas as pl
from jax.experimental.pallas import tpu as pltpu

_VMEM_BUDGET_BYTES = 20 * 1024 * 1024  # conservative: fits default scoped VMEM on v6e/v7x


def _downsample_conv_kernel(x_ref, w_ref, b_ref, o_ref, acc_ref, *maybe_lhs, fuse_kw):
    """One (batch, output-row-tile) grid step of the stride-2, pad-1, 3x3 conv.

    x_ref  : (1, 3, TH, 2, Wh, C)  row-grouped / col-phase-split input tile (compute dtype)
    w_ref  : (3, 3*C, Coutp) if fuse_kw else (9, C, Coutp)  (compute dtype)
    b_ref  : (1, Coutp)            bias (f32)
    o_ref  : (1, TH, Wo, Coutp)    output tile (x.dtype)
    acc_ref: VMEM (TH*Wo, Coutp)   f32 accumulator scratch
    maybe_lhs: optional VMEM (TH*Wo, 3*C) im2col staging scratch (fused path only)
    """
    lhs_ref = maybe_lhs[0] if maybe_lhs else None
    TH = x_ref.shape[2]
    C = x_ref.shape[5]
    Wo = o_ref.shape[2]
    Coutp = o_ref.shape[3]
    M = TH * Wo

    # Bias goes straight into the accumulator: no separate full-tile add pass.
    acc_ref[...] = jnp.broadcast_to(b_ref[...], (M, Coutp))

    if fuse_kw:
        # Lane-aligned Cin: stage the 3 kw-taps side by side (aligned lane slices of a
        # VMEM scratch) and do one K = 3*C matmul per kernel row, accumulating in VMEM.
        for kh in range(3):
            for kw in range(3):
                cph, dw = kw % 2, kw // 2
                tap = x_ref[0, kh, :, cph, pl.ds(dw, Wo), :]            # (TH, Wo, C)
                lhs_ref[:, kw * C:(kw + 1) * C] = tap.reshape(M, C)     # Wo%8==0 -> free reshape
            acc_ref[...] += jnp.dot(lhs_ref[...], w_ref[kh],
                                    preferred_element_type=jnp.float32)
    else:
        # Small / unaligned Cin: 9 accumulating MXU taps into the VMEM f32 scratch
        # (in-place adds, MRB-friendly; no live-value accumulator spills).
        for kh in range(3):
            for kw in range(3):
                cph, dw = kw % 2, kw // 2
                tap = x_ref[0, kh, :, cph, pl.ds(dw, Wo), :]            # (TH, Wo, C)
                acc_ref[...] += jnp.dot(tap.reshape(M, C), w_ref[kh * 3 + kw],
                                        preferred_element_type=jnp.float32)

    o_ref[...] = acc_ref[...].reshape(1, TH, Wo, Coutp).astype(o_ref.dtype)


def _pick_tile_and_vmem(Ho, Wo, Wh, C, Coutp, in_item, out_item, fuse_kw):
    """Row-tile size TH from a VMEM budget + the vmem_limit_bytes to request."""

    def footprint(th):
        in_blk = 3 * th * 2 * Wh * C * in_item * 2        # input tile, double-buffered
        out_blk = th * Wo * Coutp * out_item * 2          # output tile, double-buffered
        acc = th * Wo * Coutp * 4                         # f32 accumulator scratch
        lhs = th * Wo * 3 * C * in_item if fuse_kw else 0 # im2col staging scratch
        w = 9 * C * Coutp * in_item * 2                   # weights (double-buffered)
        b = 2 * Coutp * 4
        return in_blk + out_blk + acc + lhs + w + b

    # Target matmul M = TH*Wo ~ 1024, row tiles a multiple of 8 (sublane alignment).
    th = max(1, min(Ho, max(1, 1024 // max(Wo, 1))))
    if th < Ho:
        th = min(Ho, ((th + 7) // 8) * 8)
    while th > 8 and footprint(th) > _VMEM_BUDGET_BYTES:
        th -= 8
    while th > 1 and footprint(th) > _VMEM_BUDGET_BYTES:
        th -= 1

    need = footprint(th)
    vmem_limit = int(min(need + (6 << 20), 64 << 20))
    vmem_limit = max(vmem_limit, 16 << 20)
    return th, vmem_limit


@functools.partial(jax.jit, static_argnames=("compute_dtype",))
def downsample_forward(x_nchw, temb, weight, bias, *, compute_dtype=jnp.bfloat16):
    """Forward pass of DownSample (stride-2, pad-1, 3x3 conv).

    x_nchw: (N, C, H, W); temb: unused; weight: (Cout, Cin, 3, 3) OIHW; bias: (Cout,)
    returns (N, Cout, Ho, Wo) in x.dtype (NCHW, matching PyTorch).
    """
    del temb  # unused by DownSample.forward
    N, C, H, W = x_nchw.shape
    Cout = weight.shape[0]
    Ho = (H - 1) // 2 + 1
    Wo = (W - 1) // 2 + 1
    Wh = Wo + 1  # half-resolution width incl. the kw=2 column

    fuse_kw = (C % 128 == 0)  # lane-aligned Cin -> fused K=3*Cin matmuls
    Coutp = Cout if Cout % 128 == 0 else ((Cout + 127) // 128) * 128

    # ---- glue (cast to compute dtype FIRST so the reshuffle moves half the bytes) ----
    xh = jnp.transpose(x_nchw.astype(compute_dtype), (0, 2, 3, 1))        # NHWC
    pad_b = 2 * Ho - H
    pad_r = 2 * Wo + 1 - W
    xp = jnp.pad(xh, ((0, 0), (1, pad_b), (1, pad_r), (0, 0)))            # pad=1 + tail pad
    # Row groups + column phase split:
    #   xr[n, kh, oh, cph, b, c] == x_padded[n, 2*oh + kh, 2*b + cph, c]
    xr = jnp.stack([xp[:, kh:kh + 2 * Ho:2] for kh in range(3)], axis=1)  # (N,3,Ho,2Wh,C)
    xr = xr.reshape(N, 3, Ho, Wh, 2, C).transpose(0, 1, 2, 4, 3, 5)       # (N,3,Ho,2,Wh,C)

    # Weights OIHW -> (kh, kw, Cin, Cout) -> matmul layout, Cout lane-padded only if needed.
    wk = jnp.transpose(weight, (2, 3, 1, 0))
    wmat = wk.reshape(3, 3 * C, Cout) if fuse_kw else wk.reshape(9, C, Cout)
    wmat = jnp.pad(wmat, ((0, 0), (0, 0), (0, Coutp - Cout))).astype(compute_dtype)
    b2d = jnp.pad(bias.astype(jnp.float32).reshape(1, Cout), ((0, 0), (0, Coutp - Cout)))

    in_item = jnp.dtype(compute_dtype).itemsize
    out_item = jnp.dtype(x_nchw.dtype).itemsize
    TH, vmem_limit = _pick_tile_and_vmem(Ho, Wo, Wh, C, Coutp, in_item, out_item, fuse_kw)
    grid = (N, pl.cdiv(Ho, TH))  # partial tail handled by Pallas masked writeback

    scratch = [pltpu.VMEM((TH * Wo, Coutp), jnp.float32)]
    if fuse_kw:
        scratch.append(pltpu.VMEM((TH * Wo, 3 * C), compute_dtype))

    out = pl.pallas_call(
        functools.partial(_downsample_conv_kernel, fuse_kw=fuse_kw),
        out_shape=jax.ShapeDtypeStruct((N, Ho, Wo, Coutp), x_nchw.dtype),
        grid_spec=pltpu.PrefetchScalarGridSpec(
            num_scalar_prefetch=0,
            grid=grid,
            in_specs=[
                # row-tiled input: each core/grid-step only fetches its own rows
                pl.BlockSpec((1, 3, TH, 2, Wh, C), lambda n, i: (n, 0, i, 0, 0, 0)),
                # weights / bias: constant index map (revisited, not re-fetched)
                pl.BlockSpec(wmat.shape, lambda n, i: (0, 0, 0)),
                pl.BlockSpec((1, Coutp), lambda n, i: (0, 0)),
            ],
            out_specs=pl.BlockSpec((1, TH, Wo, Coutp), lambda n, i: (n, i, 0, 0)),
            scratch_shapes=scratch,
        ),
        compiler_params=pltpu.CompilerParams(
            dimension_semantics=("parallel", "parallel"),
            vmem_limit_bytes=vmem_limit),
    )(xr, wmat, b2d)

    y = out if Coutp == Cout else out[..., :Cout]
    return jnp.transpose(y, (0, 3, 1, 2))  # NHWC -> NCHW to match the PyTorch interface


def init_downsample_params(key, in_ch):
    """Deterministic xavier_uniform_ weight / zero bias, matching initialize()."""
    fan_in = in_ch * 3 * 3
    fan_out = in_ch * 3 * 3
    bound = float(np.sqrt(6.0 / (fan_in + fan_out)))
    weight = jax.random.uniform(
        key, (in_ch, in_ch, 3, 3), minval=-bound, maxval=bound, dtype=jnp.float32)
    bias = jnp.zeros((in_ch,), dtype=jnp.float32)
    return weight, bias


def _reference(x, weight, bias):
    y = jax.lax.conv_general_dilated(
        x, weight, window_strides=(2, 2), padding=((1, 1), (1, 1)),
        dimension_numbers=("NCHW", "OIHW", "NCHW"))
    return y + bias.reshape(1, -1, 1, 1)


if __name__ == "__main__":
    key = jax.random.PRNGKey(0)
    k_x, k_t, k_w, k_b, k_x2, k_w2, k_b2 = jax.random.split(key, 7)

    # --- primary small test (module-consistent shapes): exercises the 9-tap path ---
    N, C, H, W = 2, 4, 16, 16
    x = jax.random.normal(k_x, (N, C, H, W), dtype=jnp.float32)
    temb = jax.random.normal(k_t, (N, 32), dtype=jnp.float32)  # unused by forward
    weight, bias = init_downsample_params(k_w, C)
    bias = bias + 0.1 * jax.random.normal(k_b, (C,), dtype=jnp.float32)  # exercise bias path
    y_ref = _reference(x, weight, bias)

    y32 = jax.block_until_ready(
        downsample_forward(x, temb, weight, bias, compute_dtype=jnp.float32))
    np.testing.assert_allclose(np.asarray(y32), np.asarray(y_ref), rtol=1e-5, atol=1e-5)

    ybf = jax.block_until_ready(downsample_forward(x, temb, weight, bias))
    np.testing.assert_allclose(np.asarray(ybf), np.asarray(y_ref), rtol=3e-2, atol=3e-2)

    # --- lane-aligned channel count: exercises the fused K=3*Cin matmul path ---
    N2, C2, H2, W2 = 1, 128, 16, 16
    x2 = jax.random.normal(k_x2, (N2, C2, H2, W2), dtype=jnp.float32)
    temb2 = jnp.zeros((N2, 32), dtype=jnp.float32)
    weight2, bias2 = init_downsample_params(k_w2, C2)
    bias2 = bias2 + 0.1 * jax.random.normal(k_b2, (C2,), dtype=jnp.float32)
    y2_ref = _reference(x2, weight2, bias2)

    y2_32 = jax.block_until_ready(
        downsample_forward(x2, temb2, weight2, bias2, compute_dtype=jnp.float32))
    np.testing.assert_allclose(np.asarray(y2_32), np.asarray(y2_ref), rtol=1e-4, atol=1e-4)

    y2_bf = jax.block_until_ready(downsample_forward(x2, temb2, weight2, bias2))
    np.testing.assert_allclose(np.asarray(y2_bf), np.asarray(y2_ref), rtol=5e-2, atol=5e-2)

    print("KERNEL_OK")
</pallas_src>

<mosaic_0001>
module attributes {stable_mosaic.version = 11 : i64} {
  func.func @_downsample_conv_kernel(%arg0: i32, %arg1: i32, %arg2: memref<1x3x8x2x9x4xf32, #tpu.memory_space<vmem>>, %arg3: memref<9x4x128xf32, #tpu.memory_space<vmem>>, %arg4: memref<1x128xf32, #tpu.memory_space<vmem>>, %arg5: memref<1x8x8x128xf32, #tpu.memory_space<vmem>>, %arg6: memref<64x128xf32, #tpu.memory_space<vmem>>) attributes {dimension_semantics = [#tpu.dimension_semantics<parallel>, #tpu.dimension_semantics<parallel>], iteration_bounds = array<i64: 2, 1>, scalar_prefetch = 0 : i64, scratch_operands = 1 : i64, tpu.core_type = #tpu.core_type<tc>, window_params = [{transform_indices = @transform_0, window_bounds = array<i64: 1, 3, 8, 2, 9, 4>}, {pipeline_mode = #tpu.pipeline_mode<synchronous>, transform_indices = @transform_1, window_bounds = array<i64: 9, 4, 128>}, {pipeline_mode = #tpu.pipeline_mode<synchronous>, transform_indices = @transform_2, window_bounds = array<i64: 1, 128>}, {transform_indices = @transform_3, window_bounds = array<i64: 1, 8, 8, 128>}]} {
    %c0 = arith.constant 0 : index
    %c0_0 = arith.constant 0 : index
    %0 = vector.load %arg4[%c0, %c0_0] : memref<1x128xf32, #tpu.memory_space<vmem>>, vector<1x128xf32>
    %1 = vector.shape_cast %0 : vector<1x128xf32> to vector<1x128xf32>
    %2 = vector.broadcast %1 : vector<1x128xf32> to vector<64x128xf32>
    %c0_1 = arith.constant 0 : index
    %c0_2 = arith.constant 0 : index
    %3 = vector.load %arg6[%c0_1, %c0_2] : memref<64x128xf32, #tpu.memory_space<vmem>>, vector<64x128xf32>
    tpu.vector_store %arg6[%c0_1, %c0_2], %2 {strides = array<i32>} : memref<64x128xf32, #tpu.memory_space<vmem>>, vector<64x128xf32>,
    %c0_3 = arith.constant 0 : index
    %c0_4 = arith.constant 0 : index
    %c0_5 = arith.constant 0 : index
    %c0_6 = arith.constant 0 : index
    %c0_7 = arith.constant 0 : index
    %c0_8 = arith.constant 0 : index
    %4 = vector.load %arg2[%c0_3, %c0_4, %c0_5, %c0_6, %c0_7, %c0_8] : memref<1x3x8x2x9x4xf32, #tpu.memory_space<vmem>>, vector<1x1x8x1x8x4xf32>
    %5 = vector.shape_cast %4 : vector<1x1x8x1x8x4xf32> to vector<8x8x4xf32>
    %c0_9 = arith.constant 0 : index
    %c0_10 = arith.constant 0 : index
    %6 = vector.load %arg6[%c0_9, %c0_10] : memref<64x128xf32, #tpu.memory_space<vmem>>, vector<64x128xf32>
    %7 = vector.shape_cast %5 : vector<8x8x4xf32> to vector<64x4xf32>
    %c0_11 = arith.constant 0 : index
    %c0_12 = arith.constant 0 : index
    %c0_13 = arith.constant 0 : index
    %8 = vector.load %arg3[%c0_11, %c0_12, %c0_13] : memref<9x4x128xf32, #tpu.memory_space<vmem>>, vector<1x4x128xf32>
    %9 = vector.shape_cast %8 : vector<1x4x128xf32> to vector<4x128xf32>
    %cst = arith.constant dense<0.000000e+00> : vector<64x128xf32>
    %10 = tpu.matmul %7, %9, %cst {dimension_numbers = #tpu.dot_dimension_numbers<[1], [0], [0], [1], [0, 0, 1, 1], [], []>} : vector<64x4xf32>, vector<4x128xf32>, vector<64x128xf32> -> vector<64x128xf32>
    %11 = arith.addf %6, %10 : vector<64x128xf32>
    %c0_14 = arith.constant 0 : index
    %c0_15 = arith.constant 0 : index
    %12 = vector.load %arg6[%c0_14, %c0_15] : memref<64x128xf32, #tpu.memory_space<vmem>>, vector<64x128xf32>
    tpu.vector_store %arg6[%c0_14, %c0_15], %11 {strides = array<i32>} : memref<64x128xf32, #tpu.memory_space<vmem>>, vector<64x128xf32>,
    %c0_16 = arith.constant 0 : index
    %c0_17 = arith.constant 0 : index
    %c0_18 = arith.constant 0 : index
    %c1 = arith.constant 1 : index
    %c0_19 = arith.constant 0 : index
    %c0_20 = arith.constant 0 : index
    %13 = vector.load %arg2[%c0_16, %c0_17, %c0_18, %c1, %c0_19, %c0_20] : memref<1x3x8x2x9x4xf32, #tpu.memory_space<vmem>>, vector<1x1x8x1x8x4xf32>
    %14 = vector.shape_cast %13 : vector<1x1x8x1x8x4xf32> to vector<8x8x4xf32>
    %c0_21 = arith.constant 0 : index
    %c0_22 = arith.constant 0 : index
    %15 = vector.load %arg6[%c0_21, %c0_22] : memref<64x128xf32, #tpu.memory_space<vmem>>, vector<64x128xf32>
    %16 = vector.shape_cast %14 : vector<8x8x4xf32> to vector<64x4xf32>
    %c1_23 = arith.constant 1 : index
    %c0_24 = arith.constant 0 : index
    %c0_25 = arith.constant 0 : index
    %17 = vector.load %arg3[%c1_23, %c0_24, %c0_25] : memref<9x4x128xf32, #tpu.memory_space<vmem>>, vector<1x4x128xf32>
    %18 = vector.shape_cast %17 : vector<1x4x128xf32> to vector<4x128xf32>
    %cst_26 = arith.constant dense<0.000000e+00> : vector<64x128xf32>
    %19 = tpu.matmul %16, %18, %cst_26 {dimension_numbers = #tpu.dot_dimension_numbers<[1], [0], [0], [1], [0, 0, 1, 1], [], []>} : vector<64x4xf32>, vector<4x128xf32>, vector<64x128xf32> -> vector<64x128xf32>
    %20 = arith.addf %15, %19 : vector<64x128xf32>
    %c0_27 = arith.constant 0 : index
    %c0_28 = arith.constant 0 : index
    %21 = vector.load %arg6[%c0_27, %c0_28] : memref<64x128xf32, #tpu.memory_space<vmem>>, vector<64x128xf32>
    tpu.vector_store %arg6[%c0_27, %c0_28], %20 {strides = array<i32>} : memref<64x128xf32, #tpu.memory_space<vmem>>, vector<64x128xf32>,
    %c0_29 = arith.constant 0 : index
    %c0_30 = arith.constant 0 : index
    %c0_31 = arith.constant 0 : index
    %c0_32 = arith.constant 0 : index
    %c1_33 = arith.constant 1 : index
    %c0_34 = arith.constant 0 : index
    %22 = vector.load %arg2[%c0_29, %c0_30, %c0_31, %c0_32, %c1_33, %c0_34] : memref<1x3x8x2x9x4xf32, #tpu.memory_space<vmem>>, vector<1x1x8x1x8x4xf32>
    %23 = vector.shape_cast %22 : vector<1x1x8x1x8x4xf32> to vector<8x8x4xf32>
    %c0_35 = arith.constant 0 : index
    %c0_36 = arith.constant 0 : index
    %24 = vector.load %arg6[%c0_35, %c0_36] : memref<64x128xf32, #tpu.memory_space<vmem>>, vector<64x128xf32>
    %25 = vector.shape_cast %23 : vector<8x8x4xf32> to vector<64x4xf32>
    %c2 = arith.constant 2 : index
    %c0_37 = arith.constant 0 : index
    %c0_38 = arith.constant 0 : index
    %26 = vector.load %arg3[%c2, %c0_37, %c0_38] : memref<9x4x128xf32, #tpu.memory_space<vmem>>, vector<1x4x128xf32>
    %27 = vector.shape_cast %26 : vector<1x4x128xf32> to vector<4x128xf32>
    %cst_39 = arith.constant dense<0.000000e+00> : vector<64x128xf32>
    %28 = tpu.matmul %25, %27, %cst_39 {dimension_numbers = #tpu.dot_dimension_numbers<[1], [0], [0], [1], [0, 0, 1, 1], [], []>} : vector<64x4xf32>, vector<4x128xf32>, vector<64x128xf32> -> vector<64x128xf32>
    %29 = arith.addf %24, %28 : vector<64x128xf32>
    %c0_40 = arith.constant 0 : index
    %c0_41 = arith.constant 0 : index
    %30 = vector.load %arg6[%c0_40, %c0_41] : memref<64x128xf32, #tpu.memory_space<vmem>>, vector<64x128xf32>
    tpu.vector_store %arg6[%c0_40, %c0_41], %29 {strides = array<i32>} : memref<64x128xf32, #tpu.memory_space<vmem>>, vector<64x128xf32>,
    %c0_42 = arith.constant 0 : index
    %c1_43 = arith.constant 1 : index
    %c0_44 = arith.constant 0 : index
    %c0_45 = arith.constant 0 : index
    %c0_46 = arith.constant 0 : index
    %c0_47 = arith.constant 0 : index
    %31 = vector.load %arg2[%c0_42, %c1_43, %c0_44, %c0_45, %c0_46, %c0_47] : memref<1x3x8x2x9x4xf32, #tpu.memory_space<vmem>>, vector<1x1x8x1x8x4xf32>
    %32 = vector.shape_cast %31 : vector<1x1x8x1x8x4xf32> to vector<8x8x4xf32>
    %c0_48 = arith.constant 0 : index
    %c0_49 = arith.constant 0 : index
    %33 = vector.load %arg6[%c0_48, %c0_49] : memref<64x128xf32, #tpu.memory_space<vmem>>, vector<64x128xf32>
    %34 = vector.shape_cast %32 : vector<8x8x4xf32> to vector<64x4xf32>
    %c3 = arith.constant 3 : index
    %c0_50 = arith.constant 0 : index
    %c0_51 = arith.constant 0 : index
    %35 = vector.load %arg3[%c3, %c0_50, %c0_51] : memref<9x4x128xf32, #tpu.memory_space<vmem>>, vector<1x4x128xf32>
    %36 = vector.shape_cast %35 : vector<1x4x128xf32> to vector<4x128xf32>
    %cst_52 = arith.constant dense<0.000000e+00> : vector<64x128xf32>
    %37 = tpu.matmul %34, %36, %cst_52 {dimension_numbers = #tpu.dot_dimension_numbers<[1], [0], [0], [1], [0, 0, 1, 1], [], []>} : vector<64x4xf32>, vector<4x128xf32>, vector<64x128xf32> -> vector<64x128xf32>
    %38 = arith.addf %33, %37 : vector<64x128xf32>
    %c0_53 = arith.constant 0 : index
    %c0_54 = arith.constant 0 : index
    %39 = vector.load %arg6[%c0_53, %c0_54] : memref<64x128xf32, #tpu.memory_space<vmem>>, vector<64x128xf32>
    tpu.vector_store %arg6[%c0_53, %c0_54], %38 {strides = array<i32>} : memref<64x128xf32, #tpu.memory_space<vmem>>, vector<64x128xf32>,
    %c0_55 = arith.constant 0 : index
    %c1_56 = arith.constant 1 : index
    %c0_57 = arith.constant 0 : index
    %c1_58 = arith.constant 1 : index
    %c0_59 = arith.constant 0 : index
    %c0_60 = arith.constant 0 : index
    %40 = vector.load %arg2[%c0_55, %c1_56, %c0_57, %c1_58, %c0_59, %c0_60] : memref<1x3x8x2x9x4xf32, #tpu.memory_space<vmem>>, vector<1x1x8x1x8x4xf32>
    %41 = vector.shape_cast %40 : vector<1x1x8x1x8x4xf32> to vector<8x8x4xf32>
    %c0_61 = arith.constant 0 : index
    %c0_62 = arith.constant 0 : index
    %42 = vector.load %arg6[%c0_61, %c0_62] : memref<64x128xf32, #tpu.memory_space<vmem>>, vector<64x128xf32>
    %43 = vector.shape_cast %41 : vector<8x8x4xf32> to vector<64x4xf32>
    %c4 = arith.constant 4 : index
    %c0_63 = arith.constant 0 : index
    %c0_64 = arith.constant 0 : index
    %44 = vector.load %arg3[%c4, %c0_63, %c0_64] : memref<9x4x128xf32, #tpu.memory_space<vmem>>, vector<1x4x128xf32>
    %45 = vector.shape_cast %44 : vector<1x4x128xf32> to vector<4x128xf32>
    %cst_65 = arith.constant dense<0.000000e+00> : vector<64x128xf32>
    %46 = tpu.matmul %43, %45, %cst_65 {dimension_numbers = #tpu.dot_dimension_numbers<[1], [0], [0], [1], [0, 0, 1, 1], [], []>} : vector<64x4xf32>, vector<4x128xf32>, vector<64x128xf32> -> vector<64x128xf32>
    %47 = arith.addf %42, %46 : vector<64x128xf32>
    %c0_66 = arith.constant 0 : index
    %c0_67 = arith.constant 0 : index
    %48 = vector.load %arg6[%c0_66, %c0_67] : memref<64x128xf32, #tpu.memory_space<vmem>>, vector<64x128xf32>
    tpu.vector_store %arg6[%c0_66, %c0_67], %47 {strides = array<i32>} : memref<64x128xf32, #tpu.memory_space<vmem>>, vector<64x128xf32>,
    %c0_68 = arith.constant 0 : index
    %c1_69 = arith.constant 1 : index
    %c0_70 = arith.constant 0 : index
    %c0_71 = arith.constant 0 : index
    %c1_72 = arith.constant 1 : index
    %c0_73 = arith.constant 0 : index
    %49 = vector.load %arg2[%c0_68, %c1_69, %c0_70, %c0_71, %c1_72, %c0_73] : memref<1x3x8x2x9x4xf32, #tpu.memory_space<vmem>>, vector<1x1x8x1x8x4xf32>
    %50 = vector.shape_cast %49 : vector<1x1x8x1x8x4xf32> to vector<8x8x4xf32>
    %c0_74 = arith.constant 0 : index
    %c0_75 = arith.constant 0 : index
    %51 = vector.load %arg6[%c0_74, %c0_75] : memref<64x128xf32, #tpu.memory_space<vmem>>, vector<64x128xf32>
    %52 = vector.shape_cast %50 : vector<8x8x4xf32> to vector<64x4xf32>
    %c5 = arith.constant 5 : index
    %c0_76 = arith.constant 0 : index
    %c0_77 = arith.constant 0 : index
    %53 = vector.load %arg3[%c5, %c0_76, %c0_77] : memref<9x4x128xf32, #tpu.memory_space<vmem>>, vector<1x4x128xf32>
    %54 = vector.shape_cast %53 : vector<1x4x128xf32> to vector<4x128xf32>
    %cst_78 = arith.constant dense<0.000000e+00> : vector<64x128xf32>
    %55 = tpu.matmul %52, %54, %cst_78 {dimension_numbers = #tpu.dot_dimension_numbers<[1], [0], [0], [1], [0, 0, 1, 1], [], []>} : vector<64x4xf32>, vector<4x128xf32>, vector<64x128xf32> -> vector<64x128xf32>
    %56 = arith.addf %51, %55 : vector<64x128xf32>
    %c0_79 = arith.constant 0 : index
    %c0_80 = arith.constant 0 : index
    %57 = vector.load %arg6[%c0_79, %c0_80] : memref<64x128xf32, #tpu.memory_space<vmem>>, vector<64x128xf32>
    tpu.vector_store %arg6[%c0_79, %c0_80], %56 {strides = array<i32>} : memref<64x128xf32, #tpu.memory_space<vmem>>, vector<64x128xf32>,
    %c0_81 = arith.constant 0 : index
    %c2_82 = arith.constant 2 : index
    %c0_83 = arith.constant 0 : index
    %c0_84 = arith.constant 0 : index
    %c0_85 = arith.constant 0 : index
    %c0_86 = arith.constant 0 : index
    %58 = vector.load %arg2[%c0_81, %c2_82, %c0_83, %c0_84, %c0_85, %c0_86] : memref<1x3x8x2x9x4xf32, #tpu.memory_space<vmem>>, vector<1x1x8x1x8x4xf32>
    %59 = vector.shape_cast %58 : vector<1x1x8x1x8x4xf32> to vector<8x8x4xf32>
    %c0_87 = arith.constant 0 : index
    %c0_88 = arith.constant 0 : index
    %60 = vector.load %arg6[%c0_87, %c0_88] : memref<64x128xf32, #tpu.memory_space<vmem>>, vector<64x128xf32>
    %61 = vector.shape_cast %59 : vector<8x8x4xf32> to vector<64x4xf32>
    %c6 = arith.constant 6 : index
    %c0_89 = arith.constant 0 : index
    %c0_90 = arith.constant 0 : index
    %62 = vector.load %arg3[%c6, %c0_89, %c0_90] : memref<9x4x128xf32, #tpu.memory_space<vmem>>, vector<1x4x128xf32>
    %63 = vector.shape_cast %62 : vector<1x4x128xf32> to vector<4x128xf32>
    %cst_91 = arith.constant dense<0.000000e+00> : vector<64x128xf32>
    %64 = tpu.matmul %61, %63, %cst_91 {dimension_numbers = #tpu.dot_dimension_numbers<[1], [0], [0], [1], [0, 0, 1, 1], [], []>} : vector<64x4xf32>, vector<4x128xf32>, vector<64x128xf32> -> vector<64x128xf32>
    %65 = arith.addf %60, %64 : vector<64x128xf32>
    %c0_92 = arith.constant 0 : index
    %c0_93 = arith.constant 0 : index
    %66 = vector.load %arg6[%c0_92, %c0_93] : memref<64x128xf32, #tpu.memory_space<vmem>>, vector<64x128xf32>
    tpu.vector_store %arg6[%c0_92, %c0_93], %65 {strides = array<i32>} : memref<64x128xf32, #tpu.memory_space<vmem>>, vector<64x128xf32>,
    %c0_94 = arith.constant 0 : index
    %c2_95 = arith.constant 2 : index
    %c0_96 = arith.constant 0 : index
    %c1_97 = arith.constant 1 : index
    %c0_98 = arith.constant 0 : index
    %c0_99 = arith.constant 0 : index
    %67 = vector.load %arg2[%c0_94, %c2_95, %c0_96, %c1_97, %c0_98, %c0_99] : memref<1x3x8x2x9x4xf32, #tpu.memory_space<vmem>>, vector<1x1x8x1x8x4xf32>
    %68 = vector.shape_cast %67 : vector<1x1x8x1x8x4xf32> to vector<8x8x4xf32>
    %c0_100 = arith.constant 0 : index
    %c0_101 = arith.constant 0 : index
    %69 = vector.load %arg6[%c0_100, %c0_101] : memref<64x128xf32, #tpu.memory_space<vmem>>, vector<64x128xf32>
    %70 = vector.shape_cast %68 : vector<8x8x4xf32> to vector<64x4xf32>
    %c7 = arith.constant 7 : index
    %c0_102 = arith.constant 0 : index
    %c0_103 = arith.constant 0 : index
    %71 = vector.load %arg3[%c7, %c0_102, %c0_103] : memref<9x4x128xf32, #tpu.memory_space<vmem>>, vector<1x4x128xf32>
    %72 = vector.shape_cast %71 : vector<1x4x128xf32> to vector<4x128xf32>
    %cst_104 = arith.constant dense<0.000000e+00> : vector<64x128xf32>
    %73 = tpu.matmul %70, %72, %cst_104 {dimension_numbers = #tpu.dot_dimension_numbers<[1], [0], [0], [1], [0, 0, 1, 1], [], []>} : vector<64x4xf32>, vector<4x128xf32>, vector<64x128xf32> -> vector<64x128xf32>
    %74 = arith.addf %69, %73 : vector<64x128xf32>
    %c0_105 = arith.constant 0 : index
    %c0_106 = arith.constant 0 : index
    %75 = vector.load %arg6[%c0_105, %c0_106] : memref<64x128xf32, #tpu.memory_space<vmem>>, vector<64x128xf32>
    tpu.vector_store %arg6[%c0_105, %c0_106], %74 {strides = array<i32>} : memref<64x128xf32, #tpu.memory_space<vmem>>, vector<64x128xf32>,
    %c0_107 = arith.constant 0 : index
    %c2_108 = arith.constant 2 : index
    %c0_109 = arith.constant 0 : index
    %c0_110 = arith.constant 0 : index
    %c1_111 = arith.constant 1 : index
    %c0_112 = arith.constant 0 : index
    %76 = vector.load %arg2[%c0_107, %c2_108, %c0_109, %c0_110, %c1_111, %c0_112] : memref<1x3x8x2x9x4xf32, #tpu.memory_space<vmem>>, vector<1x1x8x1x8x4xf32>
    %77 = vector.shape_cast %76 : vector<1x1x8x1x8x4xf32> to vector<8x8x4xf32>
    %c0_113 = arith.constant 0 : index
    %c0_114 = arith.constant 0 : index
    %78 = vector.load %arg6[%c0_113, %c0_114] : memref<64x128xf32, #tpu.memory_space<vmem>>, vector<64x128xf32>
    %79 = vector.shape_cast %77 : vector<8x8x4xf32> to vector<64x4xf32>
    %c8 = arith.constant 8 : index
    %c0_115 = arith.constant 0 : index
    %c0_116 = arith.constant 0 : index
    %80 = vector.load %arg3[%c8, %c0_115, %c0_116] : memref<9x4x128xf32, #tpu.memory_space<vmem>>, vector<1x4x128xf32>
    %81 = vector.shape_cast %80 : vector<1x4x128xf32> to vector<4x128xf32>
    %cst_117 = arith.constant dense<0.000000e+00> : vector<64x128xf32>
    %82 = tpu.matmul %79, %81, %cst_117 {dimension_numbers = #tpu.dot_dimension_numbers<[1], [0], [0], [1], [0, 0, 1, 1], [], []>} : vector<64x4xf32>, vector<4x128xf32>, vector<64x128xf32> -> vector<64x128xf32>
    %83 = arith.addf %78, %82 : vector<64x128xf32>
    %c0_118 = arith.constant 0 : index
    %c0_119 = arith.constant 0 : index
    %84 = vector.load %arg6[%c0_118, %c0_119] : memref<64x128xf32, #tpu.memory_space<vmem>>, vector<64x128xf32>
    tpu.vector_store %arg6[%c0_118, %c0_119], %83 {strides = array<i32>} : memref<64x128xf32, #tpu.memory_space<vmem>>, vector<64x128xf32>,
    %c0_120 = arith.constant 0 : index
    %c0_121 = arith.constant 0 : index
    %85 = vector.load %arg6[%c0_120, %c0_121] : memref<64x128xf32, #tpu.memory_space<vmem>>, vector<64x128xf32>
    %86 = vector.shape_cast %85 : vector<64x128xf32> to vector<1x8x8x128xf32>
    %c0_122 = arith.constant 0 : index
    %c0_123 = arith.constant 0 : index
    %c0_124 = arith.constant 0 : index
    %c0_125 = arith.constant 0 : index
    %87 = vector.load %arg5[%c0_122, %c0_123, %c0_124, %c0_125] : memref<1x8x8x128xf32, #tpu.memory_space<vmem>>, vector<1x8x8x128xf32>
    tpu.vector_store %arg5[%c0_122, %c0_123, %c0_124, %c0_125], %86 {strides = array<i32>} : memref<1x8x8x128xf32, #tpu.memory_space<vmem>>, vector<1x8x8x128xf32>,
    return
  }
  func.func @transform_0(%arg0: i32, %arg1: i32) -> (i32, i32, i32, i32, i32, i32) {
    %c0_i32 = arith.constant 0 : i32
    %c0_i32_0 = arith.constant 0 : i32
    %c0_i32_1 = arith.constant 0 : i32
    %c0_i32_2 = arith.constant 0 : i32
    %c0_i32_3 = arith.constant 0 : i32
    return %arg0, %c0_i32, %arg1, %c0_i32_0, %c0_i32_1, %c0_i32_2 : i32, i32, i32, i32, i32, i32
  }
  func.func @transform_1(%arg0: i32, %arg1: i32) -> (i32, i32, i32) {
    %c0_i32 = arith.constant 0 : i32
    %c0_i32_0 = arith.constant 0 : i32
    %c0_i32_1 = arith.constant 0 : i32
    %c0_i32_2 = arith.constant 0 : i32
    return %c0_i32, %c0_i32_0, %c0_i32_1 : i32, i32, i32
  }
  func.func @transform_2(%arg0: i32, %arg1: i32) -> (i32, i32) {
    %c0_i32 = arith.constant 0 : i32
    %c0_i32_0 = arith.constant 0 : i32
    %c0_i32_1 = arith.constant 0 : i32
    return %c0_i32, %c0_i32_0 : i32, i32
  }
  func.func @transform_3(%arg0: i32, %arg1: i32) -> (i32, i32, i32, i32) {
    %c0_i32 = arith.constant 0 : i32
    %c0_i32_0 = arith.constant 0 : i32
    %c0_i32_1 = arith.constant 0 : i32
    return %arg0, %arg1, %c0_i32, %c0_i32_0 : i32, i32, i32, i32
  }
}

</mosaic_0001>

<bundles_post_ra>
// kernel: downsample_forward.1
= control target key start
LH: loop header
LB: loop body
LE: loop exit
PB: predicated region body
PF: predicated region fallthrough
CT: control target
= control target key end

     0   :  { %s2341_s12 = smov 0   ;;  %s2343_s13 = smov 0   ;;  %s2590_s0 = inlined_call_operand.vmem [shape: f32[2,3,8,2,9,4], index: 0, kind: input, shape index: {}]   ;;  %s2591_s1 = inlined_call_operand.vmem [shape: f32[9,4,128], index: 1, kind: input, shape index: {}]   ;;  %s2592_s2 = inlined_call_operand.vmem [shape: f32[1,128], index: 2, kind: input, shape index: {}]   ;;  %s2593_s3 = inlined_call_operand.vmem [shape: f32[2,8,8,128], index: 3, kind: output, shape index: {}]  }
   0x1   :  { %s2345_s14 = smov 0  }
   0x2 LB: > { %s25_s15 = sadd.s32 1, %s2315_s13  ;;  %p1838_p0 = scmp.ge.s32.totalorder %s2319_s14, 1  ;;  %s2319_s14 = sphi %s2345_s14, %s13_s14   ;;  %s2315_s13 = sphi %s2343_s13, %s2595_s13   ;;  %s2311_s12 = sphi %s2341_s12, %s2594_s12  }
   0x3   : > { %p27_p1 = scmp.ge.s32.totalorder %s25_s15, 2  ;;  %p159_p2 = scmp.lt.s32.totalorder %s2319_s14, 3 }
   0x5   : > { %s2597_s15 = smov (%p27_p1, %s25_s15), 0  ;;  %p160_p3 = pnand %p1838_p0, %p159_p2 }
   0x6   : > { %v244_v0 = vld [vmem:[%s2591_s1] sm:$0xf] (!%p160_p3)  ;;  %vm270_vm0 = vcmask (!%p160_p3), 1043456   ;;  %v2365_v1 = vld [vmem:[%s2591_s1 + $0x10] sm:$0xf] (!%p160_p3)  ;;  %p193_p4 = scmp.lt.s32.totalorder (!%p160_p3), %s2311_s12, 1 }
   0x7   : > { %163 = sbr.rel (%p160_p3) target bundleno = 306 (0x132), region = 32  ;;  %2072 = vmatprep.subr.msk.mxu1 (!%p160_p3), %vm270_vm0, %v244_v0  ;;  %2128 = vmatprep.subr.msk.mxu0 (!%p160_p3), %vm270_vm0, %v2365_v1  ;;  %v1860_v2 = vld [vmem:[%s2591_s1 + $0x4] sm:$0xf] (!%p160_p3)  ;;  %v1924_v3 = vld [vmem:[%s2591_s1 + $0x14] sm:$0xf] (!%p160_p3)  ;;  %vm245_vm1 = vcmask (!%p160_p3), 31744  }
   0x8   : > { %2073 = vmatpush3.msk.msra.mxu1 (!%p160_p3), %vm270_vm0, %v244_v0  ;;  %2129 = vmatpush3.msk.msra.mxu0 (!%p160_p3), %vm270_vm0, %v2365_v1  ;;  %v1942_v10 = vld [vmem:[%s2591_s1 + $0x18] sm:$0xf] (!%p160_p3)  ;;  %v1870_v11 = vld [vmem:[%s2591_s1 + $0x8] sm:$0xf] (!%p160_p3)  ;;  %v1960_v20 = vld [vmem:[%s2591_s1 + $0x1c] sm:$0xf] (!%p160_p3) }
   0x9   : > { %2086 = vmatprep.subr.msk.mxu1 (!%p160_p3), %vm270_vm0, %v1860_v2  ;;  %2142 = vmatprep.subr.msk.mxu0 (!%p160_p3), %vm270_vm0, %v1924_v3  ;;  %v1888_v29 = vld [vmem:[%s2591_s1 + $0xc] sm:$0xf] (!%p160_p3)  ;;  %v1978_v38 = vld [vmem:[%s2591_s1 + $0x20] sm:$0xf] (!%p160_p3) }
   0xe   : > { %s2599_s12 = smov (!%p193_p4, %s2311_s12), 1 }
   0xf   : > { %s2272_s24 = smul.u32 768, %s2599_s12  ;;  %s1990_s17 = sshll.u32 %s2599_s12, 6 }
  0x10   : > { %s2571_s20 = scalar_lea.vmem %s2593_s3, %s1990_s17 }
  0x11   : > { %s2387_s27 = scalar_lea.vmem %s2590_s0, %s2272_s24 }
  0x12   : > { %v228_v4 = vld [vmem:[%s2387_s27] sm:$0xff]  ;;  %v1898_v5 = vld [vmem:[%s2387_s27 + $0x110] sm:$0xff] }
  0x13   : > { %v229_v6 = vld [vmem:[%s2387_s27 + $0x20] sm:$0xff]  ;;  %2074 = vmatprep.mubr.msk.f32.mxu1 %vm245_vm1, %v228_v4  ;;  %2130 = vmatprep.mubr.msk.f32.mxu0 %vm245_vm1, %v1898_v5  ;;  %v1899_v7 = vld [vmem:[%s2387_s27 + $0x130] sm:$0xff] }
  0x14   : > { %v230_v8 = vld [vmem:[%s2387_s27 + $0x40] sm:$0xff]  ;;  %v1900_v9 = vld [vmem:[%s2387_s27 + $0x150] sm:$0xff]  ;;  %2075 = vmatmul.mubr.msk.f32.vlgmr.msra.gmra.mrb[0].mxu1 %vm245_vm1, %v229_v6  ;;  %2131 = vmatmul.mubr.msk.f32.vlgmr.msra.gmra.mrb[0].mxu0 %vm245_vm1, %v1899_v7 }
  0x15   : > { %2087 = vmatpush3.msk.msra.mxu1 %vm270_vm0, %v1860_v2  ;;  %2143 = vmatpush3.msk.msra.mxu0 %vm270_vm0, %v1924_v3  ;;  %v231_v12 = vld [vmem:[%s2387_s27 + $0x60] sm:$0xff]  ;;  %v1901_v13 = vld [vmem:[%s2387_s27 + $0x170] sm:$0xff] }
  0x16   : > { %2077 = vmatprep.mubr.msk.f32.mxu1 %vm245_vm1, %v230_v8  ;;  %2133 = vmatprep.mubr.msk.f32.mxu0 %vm245_vm1, %v1900_v9  ;;  %v232_v14 = vld [vmem:[%s2387_s27 + $0x80] sm:$0xff]  ;;  %v1852_v23 = vld [vmem:[%s2387_s27 + $0x10] sm:$0xff] }
  0x17   : > { %v1916_v15 = vld [vmem:[%s2387_s27 + $0x101] sm:$0xff]  ;;  %2156 = vmatprep.subr.msk.mxu0 %vm270_vm0, %v1942_v10  ;;  %2100 = vmatprep.subr.msk.mxu1 %vm270_vm0, %v1870_v11  ;;  %v1853_v25 = vld [vmem:[%s2387_s27 + $0x30] sm:$0xff] }
  0x18   : > { %2078 = vmatmul.mubr.msk.f32.gmra.mrb[2].mxu1 %vm245_vm1, %v231_v12  ;;  %2134 = vmatmul.mubr.msk.f32.gmra.mrb[2].mxu0 %vm245_vm1, %v1901_v13  ;;  %v233_v16 = vld [vmem:[%s2387_s27 + $0xa0] sm:$0xff]  ;;  %v1854_v27 = vld [vmem:[%s2387_s27 + $0x50] sm:$0xff] }
  0x19   : > { %2080 = vmatprep.mubr.msk.f32.mxu1 %vm245_vm1, %v232_v14  ;;  %2144 = vmatprep.mubr.msk.f32.mxu0 %vm245_vm1, %v1916_v15  ;;  %v1917_v17 = vld [vmem:[%s2387_s27 + $0x121] sm:$0xff]  ;;  %v1855_v30 = vld [vmem:[%s2387_s27 + $0x70] sm:$0xff] }
  0x1a   : > { %v234_v18 = vld [vmem:[%s2387_s27 + $0xc0] sm:$0xff]  ;;  %v1856_v32 = vld [vmem:[%s2387_s27 + $0x90] sm:$0xff] }
  0x1b   : > { %v1918_v19 = vld [vmem:[%s2387_s27 + $0x141] sm:$0xff]  ;;  %v1857_v34 = vld [vmem:[%s2387_s27 + $0xb0] sm:$0xff] }
  0x1c   : > { %2081 = vmatmul.mubr.msk.f32.gmra.mrb[4].mxu1 %vm245_vm1, %v233_v16  ;;  %2145 = vmatmul.mubr.msk.f32.vlgmr.msra.gmra.mrb[0].mxu0 %vm245_vm1, %v1917_v17  ;;  %v235_v21 = vld [vmem:[%s2387_s27 + $0xe0] sm:$0xff]  ;;  %v1858_v36 = vld [vmem:[%s2387_s27 + $0xd0] sm:$0xff] }
  0x1d   : > { %2157 = vmatpush3.msk.msra.mxu0 %vm270_vm0, %v1942_v10  ;;  %2083 = vmatprep.mubr.msk.f32.mxu1 %vm245_vm1, %v234_v18  ;;  %v1919_v22 = vld [vmem:[%s2387_s27 + $0x161] sm:$0xff]  ;;  %v1859_v39 = vld [vmem:[%s2387_s27 + $0xf0] sm:$0xff] }
  0x1e   : > { %2147 = vmatprep.mubr.msk.f32.mxu0 %vm245_vm1, %v1918_v19  ;;  %v1920_v24 = vld [vmem:[%s2387_s27 + $0x181] sm:$0xff]  ;;  %2170 = vmatprep.subr.msk.mxu0 %vm270_vm0, %v1960_v20  ;;  %v1952_v50 = vld [vmem:[%s2387_s27 + $0x210] sm:$0xff]  ;;  %v1842_v19 = vld [vmem:[%s2592_s2] ss:$0 sm:$0xff] }
  0x1f   : > { %v1921_v26 = vld [vmem:[%s2387_s27 + $0x1a1] sm:$0xff]  ;;  %v1953_v52 = vld [vmem:[%s2387_s27 + $0x230] sm:$0xff] }
  0x20   : > { %2084 = vmatmul.mubr.msk.f32.gmra.mrb[6].mxu1 %vm245_vm1, %v235_v21  ;;  %2148 = vmatmul.mubr.msk.f32.gmra.mrb[2].mxu0 %vm245_vm1, %v1919_v22  ;;  %v1922_v28 = vld [vmem:[%s2387_s27 + $0x1c1] sm:$0xff]  ;;  %v1954_v54 = vld [vmem:[%s2387_s27 + $0x250] sm:$0xff] }
  0x21   : > { %2088 = vmatprep.mubr.msk.f32.mxu1 %vm245_vm1, %v1852_v23  ;;  %2150 = vmatprep.mubr.msk.f32.mxu0 %vm245_vm1, %v1920_v24  ;;  %v1923_v31 = vld [vmem:[%s2387_s27 + $0x1e1] sm:$0xff]  ;;  %v1955_v56 = vld [vmem:[%s2387_s27 + $0x270] sm:$0xff] }
  0x22   : > { %v1934_v33 = vld [vmem:[%s2387_s27 + $0x200] sm:$0xff]  ;;  %v1956_v58 = vld [vmem:[%s2387_s27 + $0x290] sm:$0xff] }
  0x23   : > { %v1935_v35 = vld [vmem:[%s2387_s27 + $0x220] sm:$0xff]  ;;  %v1957_v60 = vld [vmem:[%s2387_s27 + $0x2b0] sm:$0xff] }
  0x24   : > { %2089 = vmatmul.mubr.msk.f32.vlgmr.msra.gmra.mrb[0].mxu1 %vm245_vm1, %v1853_v25  ;;  %2151 = vmatmul.mubr.msk.f32.gmra.mrb[4].mxu0 %vm245_vm1, %v1921_v26  ;;  %v1936_v37 = vld [vmem:[%s2387_s27 + $0x240] sm:$0xff]  ;;  %v1958_v62 = vld [vmem:[%s2387_s27 + $0x2d0] sm:$0xff] }
  0x25   : > { %2101 = vmatpush3.msk.msra.mxu1 %vm270_vm0, %v1870_v11  ;;  %2091 = vmatprep.mubr.msk.f32.mxu1 %vm245_vm1, %v1854_v27  ;;  %v1937_v40 = vld [vmem:[%s2387_s27 + $0x260] sm:$0xff]  ;;  %v1959_v0 = vld [vmem:[%s2387_s27 + $0x2f0] sm:$0xff] }
  0x26   : > { %2153 = vmatprep.mubr.msk.f32.mxu0 %vm245_vm1, %v1922_v28  ;;  %2114 = vmatprep.subr.msk.mxu1 %vm270_vm0, %v1888_v29  ;;  %v562_v41 = vld [vmem:[%s2387_s27 + $0x1] sm:$0xff]  ;;  %v1902_v9 = vld [vmem:[%s2387_s27 + $0x190] sm:$0xff] }
  0x27   : > { %v1938_v42 = vld [vmem:[%s2387_s27 + $0x280] sm:$0xff]  ;;  %v1903_v11 = vld [vmem:[%s2387_s27 + $0x1b0] sm:$0xff] }
  0x28   : > { %2092 = vmatmul.mubr.msk.f32.gmra.mrb[2].mxu1 %vm245_vm1, %v1855_v30  ;;  %2154 = vmatmul.mubr.msk.f32.gmra.mrb[6].mxu0 %vm245_vm1, %v1923_v31  ;;  %v563_v43 = vld [vmem:[%s2387_s27 + $0x21] sm:$0xff]  ;;  %v1904_v13 = vld [vmem:[%s2387_s27 + $0x1d0] sm:$0xff] }
  0x29   : > { %2094 = vmatprep.mubr.msk.f32.mxu1 %vm245_vm1, %v1856_v32  ;;  %2158 = vmatprep.mubr.msk.f32.mxu0 %vm245_vm1, %v1934_v33  ;;  %v1939_v44 = vld [vmem:[%s2387_s27 + $0x2a0] sm:$0xff]  ;;  %v1905_v15 = vld [vmem:[%s2387_s27 + $0x1f0] sm:$0xff] }
  0x2a   : > { %v564_v45 = vld [vmem:[%s2387_s27 + $0x41] sm:$0xff] }
  0x2b   : > { %v1940_v46 = vld [vmem:[%s2387_s27 + $0x2c0] sm:$0xff] }
  0x2c   : > { %2095 = vmatmul.mubr.msk.f32.gmra.mrb[4].mxu1 %vm245_vm1, %v1857_v34  ;;  %2159 = vmatmul.mubr.msk.f32.vlgmr.msra.gmra.mrb[0].mxu0 %vm245_vm1, %v1935_v35  ;;  %v565_v47 = vld [vmem:[%s2387_s27 + $0x61] sm:$0xff] }
  0x2d   : > { %2171 = vmatpush3.msk.msra.mxu0 %vm270_vm0, %v1960_v20  ;;  %2097 = vmatprep.mubr.msk.f32.mxu1 %vm245_vm1, %v1858_v36  ;;  %v1941_v48 = vld [vmem:[%s2387_s27 + $0x2e0] sm:$0xff] }
  0x2e   : > { %2161 = vmatprep.mubr.msk.f32.mxu0 %vm245_vm1, %v1936_v37  ;;  %2184 = vmatprep.subr.msk.mxu0 %vm270_vm0, %v1978_v38  ;;  %v566_v49 = vld [vmem:[%s2387_s27 + $0x81] sm:$0xff] }
  0x2f   : > { %v567_v51 = vld [vmem:[%s2387_s27 + $0xa1] sm:$0xff] }
  0x30   : > { %2098 = vmatmul.mubr.msk.f32.gmra.mrb[6].mxu1 %vm245_vm1, %v1859_v39  ;;  %2162 = vmatmul.mubr.msk.f32.gmra.mrb[2].mxu0 %vm245_vm1, %v1937_v40  ;;  %v568_v53 = vld [vmem:[%s2387_s27 + $0xc1] sm:$0xff] }
  0x31   : > { %2102 = vmatprep.mubr.msk.f32.mxu1 %vm245_vm1, %v562_v41  ;;  %2164 = vmatprep.mubr.msk.f32.mxu0 %vm245_vm1, %v1938_v42  ;;  %v569_v55 = vld [vmem:[%s2387_s27 + $0xe1] sm:$0xff] }
  0x32   : > { %v1880_v57 = vld [vmem:[%s2387_s27 + $0x100] sm:$0xff] }
  0x33   : > { %v1881_v59 = vld [vmem:[%s2387_s27 + $0x120] sm:$0xff] }
  0x34   : > { %2103 = vmatmul.mubr.msk.f32.vlgmr.msra.gmra.mrb[0].mxu1 %vm245_vm1, %v563_v43  ;;  %2165 = vmatmul.mubr.msk.f32.gmra.mrb[4].mxu0 %vm245_vm1, %v1939_v44  ;;  %v1882_v61 = vld [vmem:[%s2387_s27 + $0x140] sm:$0xff] }
  0x35   : > { %2115 = vmatpush3.msk.msra.mxu1 %vm270_vm0, %v1888_v29  ;;  %2105 = vmatprep.mubr.msk.f32.mxu1 %vm245_vm1, %v564_v45  ;;  %v1883_v63 = vld [vmem:[%s2387_s27 + $0x160] sm:$0xff] }
  0x36   : > { %2167 = vmatprep.mubr.msk.f32.mxu0 %vm245_vm1, %v1940_v46  ;;  %2198 = vmatprep.subr.msk.mxu1 %vm270_vm0, %v2365_v1  ;;  %v1884_v2 = vld [vmem:[%s2387_s27 + $0x180] sm:$0xff] }
  0x37   : > { %v1970_v3 = vld [vmem:[%s2387_s27 + $0x201] sm:$0xff] }
  0x38   : > { %2106 = vmatmul.mubr.msk.f32.gmra.mrb[2].mxu1 %vm245_vm1, %v565_v47  ;;  %2168 = vmatmul.mubr.msk.f32.gmra.mrb[6].mxu0 %vm245_vm1, %v1941_v48  ;;  %v1971_v4 = vld [vmem:[%s2387_s27 + $0x221] sm:$0xff] }
  0x39   : > { %2108 = vmatprep.mubr.msk.f32.mxu1 %vm245_vm1, %v566_v49  ;;  %2172 = vmatprep.mubr.msk.f32.mxu0 %vm245_vm1, %v1952_v50  ;;  %v1886_v5 = vld [vmem:[%s2387_s27 + $0x1c0] sm:$0xff] }
  0x3a   : > { %v1972_v6 = vld [vmem:[%s2387_s27 + $0x241] sm:$0xff] }
  0x3b   : > { %v1887_v7 = vld [vmem:[%s2387_s27 + $0x1e0] sm:$0xff] }
  0x3c   : > { %2109 = vmatmul.mubr.msk.f32.gmra.mrb[4].mxu1 %vm245_vm1, %v567_v51  ;;  %2173 = vmatmul.mubr.msk.f32.vlgmr.msra.gmra.mrb[0].mxu0 %vm245_vm1, %v1953_v52  ;;  %v1973_v8 = vld [vmem:[%s2387_s27 + $0x261] sm:$0xff] }
  0x3d   : > { %2185 = vmatpush3.msk.msra.mxu0 %vm270_vm0, %v1978_v38  ;;  %2111 = vmatprep.mubr.msk.f32.mxu1 %vm245_vm1, %v568_v53  ;;  %v1974_v10 = vld [vmem:[%s2387_s27 + $0x281] sm:$0xff] }
  0x3e   : > { %2175 = vmatprep.mubr.msk.f32.mxu0 %vm245_vm1, %v1954_v54  ;;  %v1975_v12 = vld [vmem:[%s2387_s27 + $0x2a1] sm:$0xff] }
  0x3f   : > { %v1976_v14 = vld [vmem:[%s2387_s27 + $0x2c1] sm:$0xff] }
  0x40   : > { %2112 = vmatmul.mubr.msk.f32.gmra.mrb[6].mxu1 %vm245_vm1, %v569_v55  ;;  %2176 = vmatmul.mubr.msk.f32.gmra.mrb[2].mxu0 %vm245_vm1, %v1955_v56  ;;  %v1977_v16 = vld [vmem:[%s2387_s27 + $0x2e1] sm:$0xff] }
  0x41   : > { %2116 = vmatprep.mubr.msk.f32.mxu1 %vm245_vm1, %v1880_v57  ;;  %2178 = vmatprep.mubr.msk.f32.mxu0 %vm245_vm1, %v1956_v58 }
  0x44   : > { %2117 = vmatmul.mubr.msk.f32.vlgmr.msra.gmra.mrb[0].mxu1 %vm245_vm1, %v1881_v59  ;;  %2179 = vmatmul.mubr.msk.f32.gmra.mrb[4].mxu0 %vm245_vm1, %v1957_v60 }
  0x45   : > { %2199 = vmatpush3.msk.msra.mxu1 %vm270_vm0, %v2365_v1  ;;  %2119 = vmatprep.mubr.msk.f32.mxu1 %vm245_vm1, %v1882_v61  ;;  %v1885_v1 = vld [vmem:[%s2387_s27 + $0x1a0] sm:$0xff] }
  0x46   : > { %2181 = vmatprep.mubr.msk.f32.mxu0 %vm245_vm1, %v1958_v62 }
  0x48   : > { %2120 = vmatmul.mubr.msk.f32.gmra.mrb[2].mxu1 %vm245_vm1, %v1883_v63  ;;  %2182 = vmatmul.mubr.msk.f32.gmra.mrb[6].mxu0 %vm245_vm1, %v1959_v0 }
  0x49   : > { %2122 = vmatprep.mubr.msk.f32.mxu1 %vm245_vm1, %v1884_v2  ;;  %2186 = vmatprep.mubr.msk.f32.mxu0 %vm245_vm1, %v1970_v3 }
  0x4c   : > { %2123 = vmatmul.mubr.msk.f32.gmra.mrb[4].mxu1 %vm245_vm1, %v1885_v1  ;;  %2187 = vmatmul.mubr.msk.f32.vlgmr.msra.gmra.mrb[0].mxu0 %vm245_vm1, %v1971_v4 }
  0x4d   : > { %2125 = vmatprep.mubr.msk.f32.mxu1 %vm245_vm1, %v1886_v5  ;;  %2189 = vmatprep.mubr.msk.f32.mxu0 %vm245_vm1, %v1972_v6 }
  0x50   : > { %2126 = vmatmul.mubr.msk.f32.gmra.mrb[6].mxu1 %vm245_vm1, %v1887_v7  ;;  %2190 = vmatmul.mubr.msk.f32.gmra.mrb[2].mxu0 %vm245_vm1, %v1973_v8 }
  0x51   : > { %2136 = vmatprep.mubr.msk.f32.mxu1 %vm245_vm1, %v1902_v9  ;;  %2192 = vmatprep.mubr.msk.f32.mxu0 %vm245_vm1, %v1974_v10 }
  0x54   : > { %2137 = vmatmul.mubr.msk.f32.vlgmr.msra.gmra.mrb[4].mxu1 %vm245_vm1, %v1903_v11  ;;  %2193 = vmatmul.mubr.msk.f32.gmra.mrb[4].mxu0 %vm245_vm1, %v1975_v12 }
  0x55   : > { %2139 = vmatprep.mubr.msk.f32.mxu1 %vm245_vm1, %v1904_v13  ;;  %2195 = vmatprep.mubr.msk.f32.mxu0 %vm245_vm1, %v1976_v14 }
  0x58   : > { %2140 = vmatmul.mubr.msk.f32.gmra.mrb[6].mxu1 %vm245_vm1, %v1905_v15  ;;  %2196 = vmatmul.mubr.msk.f32.gmra.mrb[6].mxu0 %vm245_vm1, %v1977_v16 }
 0x117   : > { %v2118_v17 = vpop.f32.mrb[0].mxu1 }
 0x118   : > { %v840_v18 = vpop.f32.mrb[1].mxu1  ;;  %v2200_v22 = vadd.f32 %v2118_v17, %v1842_v19 }
 0x119   : > { %v2202_v23 = vadd.f32 %v1842_v19, %v840_v18 }
 0x11b   : > { %v2121_v20 = vpop.f32.mrb[2].mxu1 }
 0x11c   : > { %v850_v21 = vpop.f32.mrb[3].mxu1  ;;  %v2204_v28 = vadd.f32 %v2121_v20, %v1842_v19 }
 0x11d   : > { %v2206_v29 = vadd.f32 %v1842_v19, %v850_v21 }
 0x11f   : > { %v2188_v24 = vpop.f32.mrb[0].mxu0 }
 0x120   : > { %v2201_v25 = vadd.f32 %v2200_v22, %v2188_v24  ;;  %v1673_v26 = vpop.f32.mrb[1].mxu0 }
 0x121   : > { %v2203_v27 = vadd.f32 %v2202_v23, %v1673_v26 }
 0x122   : > { %1737 = vst [vmem:[%s2571_s20 + $0x8] sm:$0xff] %v2201_v25 }
 0x123   : > { %1736 = vst [vmem:[%s2571_s20] sm:$0xff] %v2203_v27  ;;  %v2191_v30 = vpop.f32.mrb[2].mxu0 }
 0x124   : > { %v2205_v31 = vadd.f32 %v2204_v28, %v2191_v30  ;;  %v1683_v32 = vpop.f32.mrb[3].mxu0 }
 0x125   : > { %v2207_v33 = vadd.f32 %v2206_v29, %v1683_v32 }
 0x126   : > { %1739 = vst [vmem:[%s2571_s20 + $0x18] sm:$0xff] %v2205_v31 }
 0x127   : > { %1738 = vst [vmem:[%s2571_s20 + $0x10] sm:$0xff] %v2207_v33  ;;  %v2138_v34 = vpop.f32.mrb[4].mxu1  ;;  %v2194_v35 = vpop.f32.mrb[4].mxu0 }
 0x128   : > { %v2208_v36 = vadd.f32 %v2138_v34, %v1842_v19  ;;  %v1027_v37 = vpop.f32.mrb[5].mxu1  ;;  %v1693_v38 = vpop.f32.mrb[5].mxu0 }
 0x129   : > { %v2210_v39 = vadd.f32 %v1842_v19, %v1027_v37 }
 0x12a   : > { %v2209_v40 = vadd.f32 %v2208_v36, %v2194_v35 }
 0x12b   : > { %v2211_v41 = vadd.f32 %v2210_v39, %v1693_v38  ;;  %v2141_v42 = vpop.f32.mrb[6].mxu1  ;;  %v2197_v43 = vpop.f32.mrb[6].mxu0 }
 0x12c   : > { %1741 = vst [vmem:[%s2571_s20 + $0x28] sm:$0xff] %v2209_v40  ;;  %v2212_v44 = vadd.f32 %v2141_v42, %v1842_v19  ;;  %v1037_v45 = vpop.f32.mrb[7].mxu1  ;;  %v1703_v46 = vpop.f32.mrb[7].mxu0 }
 0x12d   : > { %1740 = vst [vmem:[%s2571_s20 + $0x20] sm:$0xff] %v2211_v41  ;;  %v2214_v47 = vadd.f32 %v1842_v19, %v1037_v45 }
 0x12e   : > { %v2213_v48 = vadd.f32 %v2212_v44, %v2197_v43 }
 0x12f   : > { %v2215_v49 = vadd.f32 %v2214_v47, %v1703_v46 }
 0x130   : > { %1743 = vst [vmem:[%s2571_s20 + $0x38] sm:$0xff] %v2213_v48 }
 0x131   : > { %1742 = vst [vmem:[%s2571_s20 + $0x30] sm:$0xff] %v2215_v49 }
 0x132 PF: > { %s13_s14 = sadd.s32 1, %s2319_s14   ;;  %s2594_s12 = smov %s2315_s13 }
 0x133   : > { %p10_p5 = scmp.ge.s32.totalorder %s13_s14, 4   ;;  %s2595_s13 = smov %s2597_s15 }
 0x135   :  { %12 = sbr.rel (!%p10_p5) target bundleno = 2 (0x2), region = 75 }

</bundles_post_ra>
